<compile_context>
chip_gen: v5e
topology: v5e:2x2
jax: 0.10.0
libtpu: 0.0.40
codegen_flags: <defaults>
</compile_context>

<pallas_src>
import functools

import jax
import jax.numpy as jnp
from jax.experimental import pallas as pl
from jax.experimental.pallas import tpu as pltpu


def _round_up(a, b):
    return (a + b - 1) // b * b


def _dsconv_kernel(xl_ref, xa_ref, xr_ref, wf_ref, o_ref, *,
                   K, dilation, left, right, L, Lt, H, c_pad):
    # xl_ref : (C_in, H)        left-halo block  (x cols [j*Lt - H, j*Lt))
    # xa_ref : (C_in, Lt)       main block       (x cols [j*Lt, (j+1)*Lt))
    # xr_ref : (C_in, H)        right-halo block (x cols [(j+1)*Lt, +H))
    # wf_ref : (K, C_out, C_in_p) fused pointwise∘depthwise per-tap weights
    # o_ref  : (C_out, Lt)
    j = pl.program_id(1)

    def pad_c(v):
        # Zero-pad the channel (contraction) dim to a sublane multiple so the
        # MXU operands stay aligned; one small VMEM copy, hidden under HBM.
        if c_pad:
            v = jnp.concatenate(
                [v, jnp.zeros((c_pad, v.shape[1]), v.dtype)], axis=0)
        return v

    # Main block; columns >= L zeroed (ragged last tile + right 'same' pad).
    col_a = jax.lax.broadcasted_iota(jnp.int32, (1, Lt), 1) + j * Lt
    xa = jnp.where(col_a < L, pad_c(xa_ref[...]), 0.0)

    # Last `left` columns of the left halo; zeroed on the first tile — this
    # IS the left 'same' zero padding (for j > 0 they are always in bounds).
    if left:
        xl = jnp.where(j > 0, pad_c(xl_ref[:, H - left:]), 0.0)
    # First `right` columns of the right halo; columns >= L zeroed.
    if right:
        col_r = jax.lax.broadcasted_iota(jnp.int32, (1, right), 1) + (j + 1) * Lt
        xr = jnp.where(col_r < L, pad_c(xr_ref[:, :right]), 0.0)

    acc = None
    for k in range(K):
        off = k * dilation - left          # static tap offset in [-left, right]
        if off < 0:
            win = jnp.concatenate([xl[:, left + off:], xa[:, :Lt + off]], axis=1)
        elif off == 0:
            win = xa
        else:
            win = jnp.concatenate([xa[:, off:], xr[:, :off]], axis=1)
        part = jnp.dot(wf_ref[k], win, preferred_element_type=jnp.float32)
        acc = part if acc is None else acc + part
    o_ref[...] = acc.astype(o_ref.dtype)


def depthwise_separable_conv1d(x, w_depth, w_point, *, dilation=2,
                               l_tile=4096, vmem_budget=20 * 1024 * 1024):
    """x: (N, C_in, L); w_depth: (C_in, C_in, K); w_point: (C_out, C_in, 1)."""
    # TODO(synk): only stride=1 is supported (PyTorch padding='same' itself
    # requires stride=1, so this covers every usable config of the module).
    N, C_in, L = x.shape
    C_out = w_point.shape[0]
    K = w_depth.shape[2]

    # PyTorch 'same' padding: total = dilation*(K-1), extra zero on the right.
    total_pad = dilation * (K - 1)
    left = total_pad // 2
    right = total_pad - left

    # Halo block width: lane-aligned and covering the receptive-field overhang.
    H = max(128, _round_up(max(total_pad, 1), 128))
    c_pad = (-C_in) % 8                    # in-VMEM channel padding (sublanes)
    C_in_p = C_in + c_pad
    itemsize = jnp.dtype(x.dtype).itemsize

    # Output-tile width: multiple of H, as large as useful, shrunk until the
    # per-step footprint fits a budget that is safe on v7x (64 MiB VMEM part).
    Lt = max(H, min(_round_up(l_tile, H), _round_up(L, H)))

    def vmem_bytes(lt):
        io_blocks = 2 * (C_in * lt + 2 * C_in * H + C_out * lt) * itemsize
        weights = 2 * K * C_out * C_in_p * itemsize
        temps = (2 * C_in_p + C_out) * lt * 4       # tap windows + f32 acc
        return io_blocks + weights + temps

    while Lt > H and vmem_bytes(Lt) > vmem_budget:
        Lt -= H
    num_tiles = pl.cdiv(L, Lt)
    ratio = Lt // H                        # H-wide halo blocks per main tile
    nbH = pl.cdiv(L, H)                    # number of H-wide blocks covering x

    # Fuse the 1x1 pointwise conv into the per-tap weights:
    #   wf[k, o, c] = sum_m wp[o, m] * wd[m, c, k]
    wf = jnp.einsum("om,mck->koc", w_point[:, :, 0], w_depth)
    if c_pad:
        wf = jnp.pad(wf, ((0, 0), (0, 0), (0, c_pad)))
    wf = wf.astype(x.dtype)

    kernel = functools.partial(_dsconv_kernel, K=K, dilation=dilation,
                               left=left, right=right, L=L, Lt=Lt, H=H,
                               c_pad=c_pad)

    # TODO(synk): for very large C_in/C_out add a C_out grid axis (and block N)
    # to bound the resident weight block; unnecessary at the small channel
    # counts this module is used with.
    return pl.pallas_call(
        kernel,
        out_shape=jax.ShapeDtypeStruct((N, C_out, L), x.dtype),
        grid=(N, num_tiles),
        in_specs=[
            # Left halo: the H columns just before this tile (clamped at 0;
            # zero-masked in-kernel on the first tile).
            pl.BlockSpec((None, C_in, H),
                         lambda n, j: (n, 0, jnp.maximum(j * ratio - 1, 0))),
            # Main tile: x columns [j*Lt, (j+1)*Lt).
            pl.BlockSpec((None, C_in, Lt), lambda n, j: (n, 0, j)),
            # Right halo: the H columns just after this tile (clamped in
            # bounds; out-of-range columns are zero-masked in-kernel).
            pl.BlockSpec((None, C_in, H),
                         lambda n, j: (n, 0, jnp.minimum((j + 1) * ratio,
                                                         nbH - 1))),
            # Fused weights: constant across the grid -> stay VMEM-resident.
            pl.BlockSpec((K, C_out, C_in_p), lambda n, j: (0, 0, 0)),
        ],
        out_specs=pl.BlockSpec((None, C_out, Lt), lambda n, j: (n, 0, j)),
        compiler_params=pltpu.CompilerParams(
            dimension_semantics=("parallel", "parallel"),
            vmem_limit_bytes=32 * 1024 * 1024),
    )(x, x, x, wf)


def _reference(x, w_depth, w_point, dilation):
    N, C_in, L = x.shape
    K = w_depth.shape[2]
    total_pad = dilation * (K - 1)
    left = total_pad // 2
    xp = jnp.pad(x, ((0, 0), (0, 0), (left, total_pad - left)))
    dw = sum(
        jnp.einsum("oc,ncl->nol", w_depth[:, :, k],
                   xp[:, :, k * dilation:k * dilation + L])
        for k in range(K)
    )
    return jnp.einsum("oc,ncl->nol", w_point[:, :, 0], dw)


if __name__ == "__main__":
    key = jax.random.PRNGKey(0)

    def run_case(N, C_in, C_out, L, K, dilation, l_tile, case_key):
        k1, k2, k3 = jax.random.split(case_key, 3)
        x = jax.random.normal(k1, (N, C_in, L), dtype=jnp.float32)
        # PyTorch Conv1d default init: U(-b, b), b = 1/sqrt(C_in * kernel_size).
        bd = 1.0 / (C_in * K) ** 0.5
        w_depth = jax.random.uniform(k2, (C_in, C_in, K), jnp.float32, -bd, bd)
        bp = 1.0 / C_in ** 0.5
        w_point = jax.random.uniform(k3, (C_out, C_in, 1), jnp.float32, -bp, bp)

        out = depthwise_separable_conv1d(x, w_depth, w_point,
                                         dilation=dilation, l_tile=l_tile)
        out = jax.block_until_ready(out)

        ref = _reference(x, w_depth, w_point, dilation)
        assert out.shape == (N, C_out, L), out.shape
        assert jnp.allclose(out, ref, atol=1e-4, rtol=1e-4), \
            float(jnp.max(jnp.abs(out - ref)))

    # Small shapes implied by the module's forward (batch=2, channels=4, L=16).
    run_case(N=2, C_in=4, C_out=8, L=16, K=3, dilation=2, l_tile=4096,
             case_key=jax.random.fold_in(key, 0))
    # Multi-tile path: halos crossing real data + ragged last tile (masked
    # output store) with a small L tile.
    run_case(N=2, C_in=4, C_out=8, L=300, K=3, dilation=2, l_tile=128,
             case_key=jax.random.fold_in(key, 1))
    # Asymmetric 'same' padding (even K) with channels already sublane-aligned.
    run_case(N=2, C_in=8, C_out=16, L=700, K=4, dilation=1, l_tile=256,
             case_key=jax.random.fold_in(key, 2))

    print("KERNEL_OK")
</pallas_src>

<mosaic_0001>
module attributes {stable_mosaic.version = 11 : i64} {
  func.func @_dsconv_kernel(%arg0: i32, %arg1: i32, %arg2: memref<1x4x128xf32, #tpu.memory_space<vmem>>, %arg3: memref<1x4x128xf32, #tpu.memory_space<vmem>>, %arg4: memref<1x4x128xf32, #tpu.memory_space<vmem>>, %arg5: memref<3x8x8xf32, #tpu.memory_space<vmem>>, %arg6: memref<1x8x128xf32, #tpu.memory_space<vmem>>) attributes {dimension_semantics = [#tpu.dimension_semantics<parallel>, #tpu.dimension_semantics<parallel>], iteration_bounds = array<i64: 2, 1>, scalar_prefetch = 0 : i64, scratch_operands = 0 : i64, tpu.core_type = #tpu.core_type<tc>, window_params = [{transform_indices = @transform_0, window_bounds = array<i64: 1, 4, 128>}, {transform_indices = @transform_1, window_bounds = array<i64: 1, 4, 128>}, {transform_indices = @transform_2, window_bounds = array<i64: 1, 4, 128>}, {pipeline_mode = #tpu.pipeline_mode<synchronous>, transform_indices = @transform_3, window_bounds = array<i64: 3, 8, 8>}, {transform_indices = @transform_4, window_bounds = array<i64: 1, 8, 128>}]} {
    %0 = tpu.iota {dimensions = array<i32: 1>} : vector<1x128xi32>
    %c128_i32 = arith.constant 128 : i32
    %1 = arith.muli %arg1, %c128_i32 : i32
    %2 = vector.broadcast %1 : i32 to vector<1x128xi32>
    %3 = arith.addi %0, %2 : vector<1x128xi32>
    %c16_i32 = arith.constant 16 : i32
    %4 = vector.broadcast %c16_i32 : i32 to vector<1x128xi32>
    %5 = arith.cmpi slt, %3, %4 : vector<1x128xi32>
    %c0 = arith.constant 0 : index
    %c0_0 = arith.constant 0 : index
    %c0_1 = arith.constant 0 : index
    %6 = vector.load %arg3[%c0, %c0_0, %c0_1] : memref<1x4x128xf32, #tpu.memory_space<vmem>>, vector<1x4x128xf32>
    %7 = vector.shape_cast %6 : vector<1x4x128xf32> to vector<4x128xf32>
    %cst = arith.constant 0.000000e+00 : f32
    %8 = vector.broadcast %cst : f32 to vector<4x128xf32>
    %9 = tpu.concatenate %7, %8 in 0 : vector<4x128xf32>, vector<4x128xf32> -> vector<8x128xf32>
    %cst_2 = arith.constant 0.000000e+00 : f32
    %10 = vector.shape_cast %5 : vector<1x128xi1> to vector<1x128xi1>
    %11 = vector.broadcast %10 : vector<1x128xi1> to vector<8x128xi1>
    %12 = vector.broadcast %cst_2 : f32 to vector<8x128xf32>
    %13 = arith.select %11, %9, %12 : vector<8x128xi1>, vector<8x128xf32>
    %c0_i32 = arith.constant 0 : i32
    %14 = arith.cmpi sgt, %arg1, %c0_i32 : i32
    %c0_3 = arith.constant 0 : index
    %c0_4 = arith.constant 0 : index
    %c126 = arith.constant 126 : index
    %15 = vector.load %arg2[%c0_3, %c0_4, %c126] : memref<1x4x128xf32, #tpu.memory_space<vmem>>, vector<1x4x2xf32>
    %16 = vector.shape_cast %15 : vector<1x4x2xf32> to vector<4x2xf32>
    %cst_5 = arith.constant 0.000000e+00 : f32
    %17 = vector.broadcast %cst_5 : f32 to vector<4x2xf32>
    %18 = tpu.concatenate %16, %17 in 0 : vector<4x2xf32>, vector<4x2xf32> -> vector<8x2xf32>
    %cst_6 = arith.constant 0.000000e+00 : f32
    %19 = vector.broadcast %cst_6 : f32 to vector<8x2xf32>
    %20 = arith.select %14, %18, %19 : vector<8x2xf32>
    %21 = tpu.iota {dimensions = array<i32: 1>} : vector<1x2xi32>
    %c1_i32 = arith.constant 1 : i32
    %22 = arith.addi %arg1, %c1_i32 : i32
    %c128_i32_7 = arith.constant 128 : i32
    %23 = arith.muli %22, %c128_i32_7 : i32
    %24 = vector.broadcast %23 : i32 to vector<1x2xi32>
    %25 = arith.addi %21, %24 : vector<1x2xi32>
    %c16_i32_8 = arith.constant 16 : i32
    %26 = vector.broadcast %c16_i32_8 : i32 to vector<1x2xi32>
    %27 = arith.cmpi slt, %25, %26 : vector<1x2xi32>
    %c0_9 = arith.constant 0 : index
    %c0_10 = arith.constant 0 : index
    %c0_11 = arith.constant 0 : index
    %28 = vector.load %arg4[%c0_9, %c0_10, %c0_11] : memref<1x4x128xf32, #tpu.memory_space<vmem>>, vector<1x4x2xf32>
    %29 = vector.shape_cast %28 : vector<1x4x2xf32> to vector<4x2xf32>
    %cst_12 = arith.constant 0.000000e+00 : f32
    %30 = vector.broadcast %cst_12 : f32 to vector<4x2xf32>
    %31 = tpu.concatenate %29, %30 in 0 : vector<4x2xf32>, vector<4x2xf32> -> vector<8x2xf32>
    %cst_13 = arith.constant 0.000000e+00 : f32
    %32 = vector.shape_cast %27 : vector<1x2xi1> to vector<1x2xi1>
    %33 = vector.broadcast %32 : vector<1x2xi1> to vector<8x2xi1>
    %34 = vector.broadcast %cst_13 : f32 to vector<8x2xf32>
    %35 = arith.select %33, %31, %34 : vector<8x2xi1>, vector<8x2xf32>
    %36 = vector.extract_strided_slice %13 {offsets = [0, 0], sizes = [8, 126], strides = [1, 1]} : vector<8x128xf32> to vector<8x126xf32>
    %37 = tpu.concatenate %20, %36 in 1 : vector<8x2xf32>, vector<8x126xf32> -> vector<8x128xf32>
    %c0_14 = arith.constant 0 : index
    %c0_15 = arith.constant 0 : index
    %c0_16 = arith.constant 0 : index
    %38 = vector.load %arg5[%c0_14, %c0_15, %c0_16] : memref<3x8x8xf32, #tpu.memory_space<vmem>>, vector<1x8x8xf32>
    %39 = vector.shape_cast %38 : vector<1x8x8xf32> to vector<8x8xf32>
    %cst_17 = arith.constant dense<0.000000e+00> : vector<8x128xf32>
    %40 = tpu.matmul %39, %37, %cst_17 {dimension_numbers = #tpu.dot_dimension_numbers<[1], [0], [0], [1], [0, 0, 1, 1], [], []>} : vector<8x8xf32>, vector<8x128xf32>, vector<8x128xf32> -> vector<8x128xf32>
    %c1 = arith.constant 1 : index
    %c0_18 = arith.constant 0 : index
    %c0_19 = arith.constant 0 : index
    %41 = vector.load %arg5[%c1, %c0_18, %c0_19] : memref<3x8x8xf32, #tpu.memory_space<vmem>>, vector<1x8x8xf32>
    %42 = vector.shape_cast %41 : vector<1x8x8xf32> to vector<8x8xf32>
    %cst_20 = arith.constant dense<0.000000e+00> : vector<8x128xf32>
    %43 = tpu.matmul %42, %13, %cst_20 {dimension_numbers = #tpu.dot_dimension_numbers<[1], [0], [0], [1], [0, 0, 1, 1], [], []>} : vector<8x8xf32>, vector<8x128xf32>, vector<8x128xf32> -> vector<8x128xf32>
    %44 = arith.addf %40, %43 : vector<8x128xf32>
    %45 = vector.extract_strided_slice %13 {offsets = [0, 2], sizes = [8, 126], strides = [1, 1]} : vector<8x128xf32> to vector<8x126xf32>
    %46 = tpu.concatenate %45, %35 in 1 : vector<8x126xf32>, vector<8x2xf32> -> vector<8x128xf32>
    %c2 = arith.constant 2 : index
    %c0_21 = arith.constant 0 : index
    %c0_22 = arith.constant 0 : index
    %47 = vector.load %arg5[%c2, %c0_21, %c0_22] : memref<3x8x8xf32, #tpu.memory_space<vmem>>, vector<1x8x8xf32>
    %48 = vector.shape_cast %47 : vector<1x8x8xf32> to vector<8x8xf32>
    %cst_23 = arith.constant dense<0.000000e+00> : vector<8x128xf32>
    %49 = tpu.matmul %48, %46, %cst_23 {dimension_numbers = #tpu.dot_dimension_numbers<[1], [0], [0], [1], [0, 0, 1, 1], [], []>} : vector<8x8xf32>, vector<8x128xf32>, vector<8x128xf32> -> vector<8x128xf32>
    %50 = arith.addf %44, %49 : vector<8x128xf32>
    %c0_24 = arith.constant 0 : index
    %c0_25 = arith.constant 0 : index
    %c0_26 = arith.constant 0 : index
    %51 = vector.load %arg6[%c0_24, %c0_25, %c0_26] : memref<1x8x128xf32, #tpu.memory_space<vmem>>, vector<1x8x128xf32>
    %52 = vector.shape_cast %51 : vector<1x8x128xf32> to vector<8x128xf32>
    %53 = vector.shape_cast %50 : vector<8x128xf32> to vector<1x8x128xf32>
    tpu.vector_store %arg6[%c0_24, %c0_25, %c0_26], %53 {strides = array<i32>} : memref<1x8x128xf32, #tpu.memory_space<vmem>>, vector<1x8x128xf32>,
    return
  }
  func.func @transform_0(%arg0: i32, %arg1: i32) -> (i32, i32, i32) {
    %c1_i32 = arith.constant 1 : i32
    %0 = arith.muli %arg1, %c1_i32 : i32
    %c1_i32_0 = arith.constant 1 : i32
    %1 = arith.subi %0, %c1_i32_0 : i32
    %c0_i32 = arith.constant 0 : i32
    %2 = arith.maxsi %1, %c0_i32 : i32
    %c0_i32_1 = arith.constant 0 : i32
    %c0_i32_2 = arith.constant 0 : i32
    return %arg0, %c0_i32_1, %2 : i32, i32, i32
  }
  func.func @transform_1(%arg0: i32, %arg1: i32) -> (i32, i32, i32) {
    %c0_i32 = arith.constant 0 : i32
    %c0_i32_0 = arith.constant 0 : i32
    return %arg0, %c0_i32, %arg1 : i32, i32, i32
  }
  func.func @transform_2(%arg0: i32, %arg1: i32) -> (i32, i32, i32) {
    %c1_i32 = arith.constant 1 : i32
    %0 = arith.addi %arg1, %c1_i32 : i32
    %c1_i32_0 = arith.constant 1 : i32
    %1 = arith.muli %0, %c1_i32_0 : i32
    %c0_i32 = arith.constant 0 : i32
    %2 = arith.minsi %1, %c0_i32 : i32
    %c0_i32_1 = arith.constant 0 : i32
    %c0_i32_2 = arith.constant 0 : i32
    return %arg0, %c0_i32_1, %2 : i32, i32, i32
  }
  func.func @transform_3(%arg0: i32, %arg1: i32) -> (i32, i32, i32) {
    %c0_i32 = arith.constant 0 : i32
    %c0_i32_0 = arith.constant 0 : i32
    %c0_i32_1 = arith.constant 0 : i32
    %c0_i32_2 = arith.constant 0 : i32
    return %c0_i32, %c0_i32_0, %c0_i32_1 : i32, i32, i32
  }
  func.func @transform_4(%arg0: i32, %arg1: i32) -> (i32, i32, i32) {
    %c0_i32 = arith.constant 0 : i32
    %c0_i32_0 = arith.constant 0 : i32
    return %arg0, %c0_i32, %arg1 : i32, i32, i32
  }
}

</mosaic_0001>

<bundles_post_ra>
// kernel: tpu_custom_call.1
= control target key start
LH: loop header
LB: loop body
LE: loop exit
PB: predicated region body
PF: predicated region fallthrough
CT: control target
= control target key end

     0   :  { %s1190_s0 = inlined_call_operand.hbm [shape: f32[2,4,16], index: 0, kind: input, shape index: {}]   ;;  %s1191_s1 = inlined_call_operand.hbm [shape: f32[2,4,16], index: 1, kind: input, shape index: {}]   ;;  %s1192_s2 = inlined_call_operand.hbm [shape: f32[2,4,16], index: 2, kind: input, shape index: {}]   ;;  %s1193_s3 = inlined_call_operand.hbm [shape: f32[3,8,8], index: 3, kind: input, shape index: {}]   ;;  %s1194_s4 = inlined_call_operand.hbm [shape: f32[2,8,16], index: 4, kind: output, shape index: {}]  }
   0x1   :  { %1200 = sst [smem:[#allocation19_spill]] %s1191_s1 }
   0x2   :  { %1201 = sst [smem:[#allocation20_spill]] %s1193_s3 }
   0x3   :  { %9 = vsyncpa [#allocation3], 0 }
   0x4   :  { %11 = vsyncpa [#allocation3 + $0x1], 0 }
   0x5   :  { %12 = vsyncpa [#allocation6], 0 }
   0x6   :  { %14 = vsyncpa [#allocation6 + $0x1], 0 }
   0x7   :  { %15 = vsyncpa [#allocation9], 0 }
   0x8   :  { %16 = vsyncpa [#allocation4], 0 }
   0x9   :  { %18 = vsyncpa [#allocation4 + $0x1], 0  ;;  %s997_s15 = smov 0   ;;  %s999_s16 = smov 0  }
   0xa   :  { %s1001_s17 = smov 0   ;;  %s1003_s18 = smov 0  }
   0xb   :  { %s1005_s19 = smov 0   ;;  %s1007_s20 = smov 0  }
   0xc LB: > { %1202 = sst [smem:[#allocation15_spill]] %s960_s19  ;;  %s1028_s21 = sadd.s32 4294967295, %s964_s20   ;;  %s964_s20 = sphi %s1007_s20, %s24_s20   ;;  %s960_s19 = sphi %s1005_s19, %s1218_s19   ;;  %s956_s18 = sphi %s1003_s18, %s1217_s18   ;;  %s952_s17 = sphi %s1001_s17, %s1221_s17   ;;  %s948_s16 = sphi %s999_s16, %s1220_s16   ;;  %s944_s15 = sphi %s997_s15, %s1219_s15  }
   0xd   : > { %1203 = sst [smem:[#allocation16_spill]] %s964_s20  ;;  %s632_s22 = sadd.s32 4294967294, %s964_s20  }
   0xe   : > { %s36_s23 = sadd.s32 1, %s960_s19  ;;  %s51_s24 = sadd.s32 1, %s952_s17 }
   0xf   : > { %p38_p0 = scmp.ge.s32.totalorder %s36_s23, 2  ;;  %p58_p1 = scmp.ne.s32.totalorder %s952_s17, %s948_s16 }
  0x10   : > { %p59_p2 = scmp.eq.s32.totalorder %s964_s20, 0  ;;  %p64_p3 = scmp.ne.s32.totalorder %s948_s16, %s944_s15 }
  0x11   : > { %s1223_s23 = smov (%p38_p0, %s36_s23), 0  ;;  %p173_p5 = scmp.eq.s32.totalorder %s1028_s21, 1 }
  0x12   : > { %1204 = sst [smem:[#allocation17_spill]] %s1223_s23  ;;  %p1040_p4 = por %p59_p2, %p58_p1 }
  0x13   : > { %s46_s26 = ssub.s32 %s960_s19, %s1223_s23  ;;  %p179_p6 = scmp.eq.s32.totalorder %s632_s22, 1 }
  0x14   : > { %p49_p7 = scmp.eq.s32.totalorder %s46_s26, 0  ;;  %p1047_p8 = por %p173_p5, %p58_p1 }
  0x15   : > { %p1054_p9 = por %p179_p6, %p64_p3  ;;  %p635_p10 = scmp.ge.s32.totalorder %s964_s20, 2 }
  0x16   : > { %s1059_s29 = scalar_select %p49_p7, %s952_s17, %s51_s24  }
  0x17   : > { %p687_p11 = scmp.lt.s32.totalorder %s964_s20, 2  ;;  %s1195_s30 = sand.u32 1, %s952_s17  }
  0x18   : > { %1208 = sst [smem:[#allocation18_spill]] %s1059_s29  ;;  %s1065_s5 = sshll.u32 %s960_s19, 2 }
  0x19   : > { %s1069_s6 = sshll.u32 %s1195_s30, 2  ;;  %p1073_p12 = pnand %p687_p11, %p1040_p4 }
  0x1a   : > { %s236_s8 = sand.u32 1, %s964_s20   ;;  %s1210_s1 = sld [smem:[#allocation19_spill]] }
  0x1b   : > { %s240_s12 = scalar_lea.vmem [#allocation5], %s1069_s6  ;;  %s1083_s22 = scalar_lea.sflag [#allocation6], %s236_s8 }
  0x1c   : > { %s249_s13 = sshll.u32 %s240_s12, 4  ;;  %p65_p13 = scmp.eq.s32.totalorder %s1028_s21, 0  ;;  %s250_s13 = int_to_ptr.vmem [resolvable:$true] %s249_s13 }
  0x1d   : > { %p633_p0 = scmp.ge.s32.totalorder %s964_s20, 1  ;;  %p186_p1 = scmp.lt.s32.totalorder %s964_s20, 3 }
  0x1e   : > { %p1096_p2 = por %p65_p13, %p64_p3  ;;  %s1212_s3 = sld [smem:[#allocation20_spill]] }
  0x1f   : > { %p1103_p4 = pnand %p633_p0, %p186_p1  ;;  %s966_s10 = smov [#allocation8]  }
  0x20   : > { %s245_s11 = scalar_lea.hbm %s1210_s1, %s1065_s5  ;;  %s967_s26 = smov 128  }
  0x21   : > { %s247_s14 = sshll.u32 %s245_s11, 4  ;;  %p668_p5 = pneg %p1103_p4  ;;  %s248_s14 = int_to_ptr.hbm [resolvable:$true] %s247_s14 }
  0x22   : > { %678 = dma.hbm_to_vmem [thread:$0]  (!%p1073_p12), %s248_s14, 64, %s250_s13, %s1083_s22  }
  0x23   : > { %s199_s11 = sshll.u32 %s966_s10, 4  ;;  %p669_p3 = pnand %p668_p5, %p65_p13  ;;  %s200_s11 = int_to_ptr.vmem [resolvable:$true] %s199_s11 }
  0x24   : > { %s197_s9 = sshll.u32 %s1212_s3, 4  ;;  %s225_s14 = scalar_lea.hbm %s1190_s0, %s1065_s5  ;;  %s198_s9 = int_to_ptr.hbm [resolvable:$true] %s197_s9 }
  0x25   : > { %s227_s25 = sshll.u32 %s225_s14, 4  ;;  %s968_s30 = smov 8   ;;  %s228_s25 = int_to_ptr.hbm [resolvable:$true] %s227_s25 }
  0x26   : > { %671 = dma.hbm_to_vmem [thread:$0]  (!%p669_p3), %s198_s9, 384, %s200_s11, [#allocation9], %s967_s26, %s967_s26, %s968_s30  }
  0x27   : > { %s217_s1 = scalar_lea.vmem [#allocation2], %s1069_s6  ;;  %s1214_s23 = sand.u32 1, %s952_s17  }
  0x28   : > { %s229_s3 = sshll.u32 %s217_s1, 4  ;;  %s214_s19 = scalar_lea.sflag [#allocation3], %s1214_s23  ;;  %s230_s3 = int_to_ptr.vmem [resolvable:$true] %s229_s3 }
  0x29   : > { %675 = dma.hbm_to_vmem [thread:$0]  (!%p1073_p12), %s228_s25, 64, %s230_s3, %s214_s19  }
  0x2a   : > { %s268_s20 = scalar_lea.hbm %s1192_s2, %s1065_s5  ;;  %s260_s12 = scalar_lea.vmem [#allocation7], %s1069_s6 }
  0x2b   : > { %s272_s13 = sshll.u32 %s260_s12, 4  ;;  %s270_s14 = sshll.u32 %s268_s20, 4  ;;  %s273_s13 = int_to_ptr.vmem [resolvable:$true] %s272_s13  ;;  %s271_s14 = int_to_ptr.hbm [resolvable:$true] %s270_s14 }
  0x2c   : > { %681 = dma.hbm_to_vmem [thread:$0]  (!%p1073_p12), %s271_s14, 64, %s273_s13, %s1083_s22  }
  0x2d   : > { %281 = sbr.rel (%p1103_p4) target bundleno = 324 (0x144), region = 36  ;;  %s1131_s1 = sand.u32 (!%p1103_p4), 1, %s948_s16  }
  0x2e   : > { %s284_s3 = scalar_lea.sflag (!%p1103_p4), [#allocation3], %s1131_s1 }
  0x32   : > { %927 = dma.done.wait (%p1096_p2), %s284_s3, 64  }
  0x33   : > { %929 = vsyncadd (%p1096_p2), %s284_s3, 4294967232  ;;  %s293_s19 = sand.u32 1, %s1028_s21   ;;  %s644_s20 = sshll.u32 %s1131_s1, 2 }
  0x34   : > { %s294_s23 = scalar_lea.sflag [#allocation6], %s293_s19  ;;  %s297_s29 = scalar_lea.vmem [#allocation5], %s644_s20 }
  0x35   : > { %931 = dma.done.wait (%p1096_p2), %s294_s23, 128  }
  0x36   : > { %933 = vsyncadd (%p1096_p2), %s294_s23, 4294967168 }
  0x37   : > { %935 = dma.done.wait (%p65_p13), [#allocation9], 384  }
  0x38   : > { %937 = vsyncadd (%p65_p13), [#allocation9], 4294966912  ;;  %v354_v0 = vlaneseq  ;;  %vm361_vm0 = vcmask 1043456   ;;  %v360_v2 = vld [vmem:[%s297_s29] sm:$0xf]  ;;  %s969_s30 = smov 126  }
  0x39   : > { %v362_v3 = vsel %vm361_vm0, %v360_v2, 0.0  ;;  %v970_v6 = vmov 0.0   ;;  %s971_s5 = smov 2   ;;  %vm396_vm2 = vcmask 64512   ;;  %v395_v8 = vld [vmem:[#allocation8 + $0x8] sm:$0xff]  ;;  %vm450_vm3 = vcmask 1031168  }
  0x3a   : > { %v355_v1 = vand.u32 127, %v354_v0  ;;  %v453_v12 = vld [vmem:[#allocation8 + $0x10] sm:$0xff]  ;;  %vm391_vm4 = vcmask 15360   ;;  %v393_v17 = vld [vmem:[#allocation8] sm:$0xff]  ;;  %s647_s21 = sshll.u32 %s1131_s1, 3  ;;  %s653_s6 = sshll.u32 %s956_s18, 3 }
  0x3b   : > { %s491_s24 = scalar_lea.hbm %s1194_s4, %s653_s6  ;;  %s347_s9 = scalar_lea.vmem [#allocation10], %s647_s21 }
  0x3c   : > { %vm359_vm1 = vcmp.lt.s32.totalorder %v355_v1, 16  ;;  %s493_s8 = sshll.u32 %s347_s9, 4  ;;  %s495_s11 = sshll.u32 %s491_s24, 4  ;;  %s494_s8 = int_to_ptr.vmem [resolvable:$true] %s493_s8  ;;  %s496_s11 = int_to_ptr.hbm [resolvable:$true] %s495_s11 }
  0x3d   : > { %v365_v4 = vsel %vm359_vm1, %v362_v3, 0.0  ;;  %648 = vmatpush.msk.msra.mxu0 %vm359_vm1, %v362_v3  ;;  %s480_s25 = scalar_lea.sflag [#allocation4], %s1131_s1  ;;  %s888_s26 = sshra.s32 %s496_s11, 4  ;;  %s889_s26 = int_to_ptr.hbm [resolvable:$true] %s888_s26 }
  0x3e   : > { %v744_v5 = vpack.i.bf16 0.0, %v365_v4  ;;  %v749_v7 = vpack.i.bf16 %v365_v4, %v970_v6  ;;  %649 = vmatmul.msk.f32.vlgmr.msra.gmra.mxu0 %vm396_vm2, %v395_v8  ;;  %s890_s18 = scalar_lea.hbm %s889_s26, 8  ;;  %s894_s13 = scalar_lea.hbm %s1194_s4, 16 }
  0x3f   : > { %p891_p6 = scmp.ne.s32.totalorder %s889_s26, %s890_s18  ;;  %p895_p12 = scmp.lt.s32.totalorder %s889_s26, %s1194_s4 }
  0x40   : > { %745 = vrot.lane.b32.xlu0 %v744_v5, %s969_s30  ;;  %p896_p13 = scmp.lt.s32.totalorder %s894_s13, %s890_s18 }
  0x41   : > { %p892_p7 = pnand %p891_p6, %p1047_p8 }
  0x42   : > { %p897_p0 = por %p896_p13, %p895_p12 }
  0x43   : > { %p893_p11 = pneg %p892_p7 }
  0x45   : > { %p898_p1 = pnand %p897_p0, %p893_p11 }
  0x48   : > { %750 = vrot.lane.b32.xlu0 %v749_v7, %s971_s5 }
  0xb2   : > { %v746_v9 = vpop.permute.xlu0 %745 }
  0xb3   : > { %v748_v10 = vunpack.i.h.bf16 %v746_v9  ;;  %v747_v11 = vunpack.i.l.bf16 %v746_v9 }
  0xb5   : > { %v451_v13 = vsel %vm450_vm3, %v747_v11, %v748_v10 }
  0xb6   : > { %472 = vmatpush.msra.mxu2 %v451_v13 }
  0xb7   : > { %651 = vmatmul.msk.f32.vlgmr.msra.gmra.mxu2 %vm396_vm2, %v453_v12 }
  0xba   : > { %v751_v14 = vpop.permute.xlu0 %750 }
  0xbb   : > { %v753_v15 = vunpack.i.h.bf16 %v751_v14  ;;  %v752_v16 = vunpack.i.l.bf16 %v751_v14  ;;  %v417_v19 = vpop.f32.mrf.mxu0 }
  0xbd   : > { %v392_v18 = vsel %vm391_vm4, %v752_v16, %v753_v15 }
  0xbe   : > { %438 = vmatpush.msra.mxu1 %v392_v18 }
  0xbf   : > { %650 = vmatmul.msk.f32.vlgmr.msra.gmra.mxu1 %vm396_vm2, %v393_v17 }
 0x13a   : > { %v474_v21 = vpop.f32.mrf.mxu2 }
 0x13c   : > { %v440_v20 = vpop.f32.mrf.mxu1 }
 0x13d   : > { %v441_v22 = vadd.f32 %v440_v20, %v417_v19 }
 0x13f   : > { %v477_v23 = vadd.f32 %v474_v21, %v441_v22 }
 0x141   : > { %478 = vst [vmem:[%s347_s9] sm:$0xff] %v477_v23 }
 0x142   : > { %901 = shalt.err (!%p898_p1)
}
 0x143   : > { %666 = dma.vmem_to_hbm [thread:$0]  (%p1047_p8), %s494_s8, 128, %s496_s11, %s480_s25  }
 0x144 PF: > { %s1215_s1 = sld [smem:[#allocation16_spill]]  ;;  %s507_s19 = sand.u32 1, %s944_s15  }
 0x145   : > { %p683_p2 = pnand %p635_p10, %p1054_p9  ;;  %s508_s20 = scalar_lea.sflag [#allocation4], %s507_s19 }
 0x147   : > { %p684_p4 = pneg %p683_p2 }
 0x149   : > { %939 = dma.done.wait (%p684_p4), %s508_s20, 128  }
 0x14a   : > { %941 = vsyncadd (%p684_p4), %s508_s20, 4294967168  ;;  %s24_s20 = sadd.s32 1, %s1215_s1   ;;  %s1216_s23 = sld [smem:[#allocation18_spill]] }
 0x14b   : > { %p21_p5 = scmp.ge.s32.totalorder %s24_s20, 4   ;;  %s1217_s18 = sld [smem:[#allocation15_spill]] }
 0x14c   : > { %s1218_s19 = sld [smem:[#allocation17_spill]]  ;;  %s1219_s15 = smov %s948_s16 }
 0x14d   : > { %s1220_s16 = smov %s952_s17  ;;  %23 = sbr.rel (!%p21_p5) target bundleno = 12 (0xc), region = 111 }
 0x150   : > { %s1221_s17 = smov %s1216_s23 }
 0x152   :  { %514 = vsyncpa [#allocation3], 1 }
 0x153   :  { %516 = vsyncpa [#allocation3 + $0x1], 1 }
 0x154   :  { %517 = vsyncpa [#allocation6], 1 }
 0x155   :  { %519 = vsyncpa [#allocation6 + $0x1], 1 }
 0x156   :  { %520 = vsyncpa [#allocation9], 1 }
 0x157   :  { %521 = vsyncpa [#allocation4], 1 }
 0x158   :  { %523 = vsyncpa [#allocation4 + $0x1], 1 }

</bundles_post_ra>
